<compile_context>
chip_gen: v6e
topology: v6e:2x2x1
jax: 0.10.0
libtpu: 0.0.40
codegen_flags: <defaults>
</compile_context>

<pallas_src>
import functools

import jax
import jax.numpy as jnp
from jax.experimental import pallas as pl
from jax.experimental.pallas import tpu as pltpu

_EPS = 1e-5


# ----------------------------------------------------------------------------
# Kernel 1: [optional fused BN+ReLU of the input] -> 3x3 conv as a single MXU
# matmul -> raw conv output + per-image sums / sums-of-squares for BN stats.
#
# Per grid step (one batch element), all refs 2-D and lane-dense:
#   x_ref     : (H, W*Cin)            raw previous-layer output (or the input)
#   scale_ref : (1, W*Cin)            previous layer's BN scale, tiled over W
#   shift_ref : (1, W*Cin)            previous layer's BN shift, tiled over W
#   w_ref     : (3*(W+2)*Cin, W*Cout) banded conv matrix, bf16
#   y_ref     : (H, W*Cout)           raw conv output (pre-BN), f32
#   s_ref     : (1, W*Cout)           column sums of y       (for batch mean)
#   ss_ref    : (1, W*Cout)           column sums of y*y     (for batch var)
# ----------------------------------------------------------------------------
def _conv3x3_kernel(*refs, cin, fuse_input_bn):
    if fuse_input_bn:
        x_ref, scale_ref, shift_ref, w_ref, y_ref, s_ref, ss_ref = refs
    else:
        x_ref, w_ref, y_ref, s_ref, ss_ref = refs

    h = x_ref.shape[0]

    x2d = x_ref[...]                                         # (H, W*Cin) f32
    if fuse_input_bn:
        # Previous layer's BatchNorm + ReLU, applied on the fly (VPU only).
        x2d = jnp.maximum(x2d * scale_ref[...] + shift_ref[...], 0.0)
    x2d = x2d.astype(jnp.bfloat16)                           # MXU-native input

    # Zero padding of the (post-activation) image: one row top/bottom on the
    # sublane axis, one pixel (= cin lanes) left/right on the lane axis.
    zrow = jnp.zeros((1, x2d.shape[1]), x2d.dtype)
    zcol = jnp.zeros((h + 2, cin), x2d.dtype)
    xp = jnp.concatenate([zrow, x2d, zrow], axis=0)          # (H+2, W*Cin)
    xp = jnp.concatenate([zcol, xp, zcol], axis=1)           # (H+2, (W+2)*Cin)

    # Row-patch matrix: the three kh taps are sublane-shifted slices of the
    # same 2-D slab (no lane reshuffles), concatenated along lanes.
    patches = jnp.concatenate([xp[kh:kh + h, :] for kh in range(3)], axis=1)

    # One matmul against the banded weight matrix, f32 accumulation; the
    # result is already in the lane-dense (H, W*Cout) output layout.
    y2d = jnp.dot(patches, w_ref[...], preferred_element_type=jnp.float32)

    y_ref[...] = y2d
    # Per-image partial sums for the BatchNorm statistics (sublane reductions
    # only); the tiny cross-image / cross-W reduction happens in glue.
    s_ref[...] = jnp.sum(y2d, axis=0, keepdims=True)
    ss_ref[...] = jnp.sum(y2d * y2d, axis=0, keepdims=True)


# ----------------------------------------------------------------------------
# Kernel 2: final BatchNorm + ReLU, fully lane-dense elementwise pass.
#   y_ref: (H, W*C)   scale_ref/shift_ref: (1, W*C)   o_ref: (H, W*C)
# ----------------------------------------------------------------------------
def _bn_relu_kernel(y_ref, scale_ref, shift_ref, o_ref):
    o_ref[...] = jnp.maximum(y_ref[...] * scale_ref[...] + shift_ref[...], 0.0)


# ----------------------------------------------------------------------------
# Glue
# ----------------------------------------------------------------------------
def _banded_conv_matrix(w_hwio, width):
    """Expand HWIO 3x3 weights into a (3*(W+2)*Cin, W*Cout) banded matrix.

    Row index = kh*(W+2)*Cin + wp*Cin + ci over the padded (H+2, (W+2)*Cin)
    slab; column index = w*Cout + co over the (H, W*Cout) output layout.
    Built once per layer at trace time (tiny at these sizes).
    """
    kh_sz, kw_sz, cin, cout = w_hwio.shape
    wp = width + kw_sz - 1
    blocks = []
    for kh in range(kh_sz):
        bk = jnp.zeros((wp, cin, width, cout), w_hwio.dtype)
        for kw in range(kw_sz):
            sel = jnp.eye(wp, width, k=-kw, dtype=w_hwio.dtype)  # sel[w+kw, w]=1
            bk = bk + sel[:, None, :, None] * w_hwio[kh, kw][None, :, None, :]
        blocks.append(bk.reshape(wp * cin, width * cout))
    return jnp.concatenate(blocks, axis=0)


def _conv_stats(x, w_banded, *, width, cin, cout, scale_row=None, shift_row=None):
    """conv (+ optional fused input BN/ReLU) over the batch; grid over N."""
    n, h, wcin = x.shape
    assert wcin == width * cin
    fuse = scale_row is not None
    kernel = functools.partial(_conv3x3_kernel, cin=cin, fuse_input_bn=fuse)

    in_specs = [pl.BlockSpec((None, h, width * cin), lambda i: (i, 0, 0))]
    args = [x]
    if fuse:
        in_specs += [pl.BlockSpec((1, width * cin), lambda i: (0, 0)),
                     pl.BlockSpec((1, width * cin), lambda i: (0, 0))]
        args += [scale_row, shift_row]
    in_specs.append(pl.BlockSpec(w_banded.shape, lambda i: (0, 0)))
    args.append(w_banded)

    out_shape = (
        jax.ShapeDtypeStruct((n, h, width * cout), jnp.float32),
        jax.ShapeDtypeStruct((n, 1, width * cout), jnp.float32),
        jax.ShapeDtypeStruct((n, 1, width * cout), jnp.float32),
    )
    out_specs = (
        pl.BlockSpec((None, h, width * cout), lambda i: (i, 0, 0)),
        pl.BlockSpec((None, 1, width * cout), lambda i: (i, 0, 0)),
        pl.BlockSpec((None, 1, width * cout), lambda i: (i, 0, 0)),
    )
    return pl.pallas_call(
        kernel,
        out_shape=out_shape,
        grid=(n,),
        in_specs=in_specs,
        out_specs=out_specs,
        compiler_params=pltpu.CompilerParams(
            dimension_semantics=("parallel",)),   # batch axis -> both v7x TCs
    )(*args)


def _bn_scale_shift(s, ss, gamma, beta, *, count, width, cout, eps=_EPS):
    """Training-mode BN scale/shift from per-image sums, tiled to lane rows.

    The conv bias is intentionally omitted upstream: with batch statistics
    mean(conv+b) = mean(conv)+b and var is unchanged, so the bias cancels
    exactly and the normalized output is identical.
    """
    tot = jnp.sum(s.reshape(-1, width, cout), axis=(0, 1))
    tot2 = jnp.sum(ss.reshape(-1, width, cout), axis=(0, 1))
    mean = tot / count
    var = tot2 / count - mean * mean              # biased variance (PyTorch BN)
    scale = gamma * jax.lax.rsqrt(var + eps)
    shift = beta - mean * scale
    # Tile the per-channel vectors across W so the kernels apply them directly
    # on the lane-dense (H, W*C) layout with no in-kernel reshape/broadcast.
    return (jnp.tile(scale, width).reshape(1, width * cout),
            jnp.tile(shift, width).reshape(1, width * cout))


def _bn_relu(y, scale_row, shift_row):
    n, h, wc = y.shape
    return pl.pallas_call(
        _bn_relu_kernel,
        out_shape=jax.ShapeDtypeStruct((n, h, wc), jnp.float32),
        grid=(n,),
        in_specs=[pl.BlockSpec((None, h, wc), lambda i: (i, 0, 0)),
                  pl.BlockSpec((1, wc), lambda i: (0, 0)),
                  pl.BlockSpec((1, wc), lambda i: (0, 0))],
        out_specs=pl.BlockSpec((None, h, wc), lambda i: (i, 0, 0)),
        compiler_params=pltpu.CompilerParams(
            dimension_semantics=("parallel",)),
    )(y, scale_row, shift_row)


@jax.jit
def convolutional_block_forward(x_nchw, params):
    """ConvolutionalBlock.forward; NCHW in / NCHW out like PyTorch.

    Conv biases in `params` are accepted but unused — training-mode BN cancels
    them exactly (see _bn_scale_shift).  In a full MSNet the NHWC / (N,H,W*C)
    layout would be kept across blocks; the boundary transposes exist only to
    match the PyTorch NCHW interface.
    """
    n, cin, h, w = x_nchw.shape
    planes = params["w1"].shape[-1]
    count = n * h * w

    x = jnp.transpose(x_nchw, (0, 2, 3, 1)).reshape(n, h, w * cin)

    # ---- layer 1: conv1 + batch stats --------------------------------------
    w1 = _banded_conv_matrix(params["w1"], w).astype(jnp.bfloat16)
    y1, s1, ss1 = _conv_stats(x, w1, width=w, cin=cin, cout=planes)
    scale1, shift1 = _bn_scale_shift(s1, ss1, params["g1"], params["be1"],
                                     count=count, width=w, cout=planes)

    # ---- layer 2: BN1+ReLU1 fused into conv2's input read + batch stats ----
    w2 = _banded_conv_matrix(params["w2"], w).astype(jnp.bfloat16)
    y2, s2, ss2 = _conv_stats(y1, w2, width=w, cin=planes, cout=planes,
                              scale_row=scale1, shift_row=shift1)
    scale2, shift2 = _bn_scale_shift(s2, ss2, params["g2"], params["be2"],
                                     count=count, width=w, cout=planes)

    # ---- final BN2 + ReLU2 --------------------------------------------------
    out = _bn_relu(y2, scale2, shift2).reshape(n, h, w, planes)
    return jnp.transpose(out, (0, 3, 1, 2))       # NHWC -> NCHW


# ----------------------------------------------------------------------------
# Pure-JAX f32 reference (bias included — the kernel drops it, outputs match).
# ----------------------------------------------------------------------------
def _ref_conv_bn_relu(x_nhwc, w_hwio, bias, gamma, beta, eps=_EPS):
    y = jax.lax.conv_general_dilated(
        x_nhwc, w_hwio, window_strides=(1, 1), padding=((1, 1), (1, 1)),
        dimension_numbers=("NHWC", "HWIO", "NHWC")) + bias
    mean = jnp.mean(y, axis=(0, 1, 2))
    var = jnp.var(y, axis=(0, 1, 2))
    return jnp.maximum((y - mean) * jax.lax.rsqrt(var + eps) * gamma + beta, 0.0)


def _ref_forward(x_nchw, params):
    x = jnp.transpose(x_nchw, (0, 2, 3, 1))
    x = _ref_conv_bn_relu(x, params["w1"], params["b1"], params["g1"], params["be1"])
    x = _ref_conv_bn_relu(x, params["w2"], params["b2"], params["g2"], params["be2"])
    return jnp.transpose(x, (0, 3, 1, 2))


if __name__ == "__main__":
    N, in_planes, planes, HW = 2, 4, 8, 16

    key = jax.random.PRNGKey(0)
    ks = jax.random.split(key, 8)
    params = {
        # conv1 weights in HWIO (3, 3, Cin, Cout) and bias
        "w1": 0.1 * jax.random.normal(ks[0], (3, 3, in_planes, planes), jnp.float32),
        "b1": 0.1 * jax.random.normal(ks[1], (planes,), jnp.float32),
        # BN1 affine params
        "g1": 1.0 + 0.1 * jax.random.normal(ks[2], (planes,), jnp.float32),
        "be1": 0.1 * jax.random.normal(ks[3], (planes,), jnp.float32),
        # conv2
        "w2": 0.1 * jax.random.normal(ks[4], (3, 3, planes, planes), jnp.float32),
        "b2": 0.1 * jax.random.normal(ks[5], (planes,), jnp.float32),
        # BN2
        "g2": 1.0 + 0.1 * jax.random.normal(ks[6], (planes,), jnp.float32),
        "be2": 0.1 * jax.random.normal(ks[7], (planes,), jnp.float32),
    }

    x = jax.random.normal(jax.random.PRNGKey(42), (N, in_planes, HW, HW), jnp.float32)

    out = convolutional_block_forward(x, params)
    out = jax.block_until_ready(out)

    ref = _ref_forward(x, params)
    assert out.shape == (N, planes, HW, HW), out.shape
    # Tolerance sized for bf16 MXU inputs (f32 accumulation) vs the f32 ref.
    assert jnp.allclose(out, ref, rtol=5e-2, atol=5e-2), \
        float(jnp.max(jnp.abs(out - ref)))

    print("KERNEL_OK")
</pallas_src>

<mosaic_0001>
module attributes {stable_mosaic.version = 11 : i64} {
  func.func @_conv3x3_kernel(%arg0: i32, %arg1: memref<1x16x64xf32, #tpu.memory_space<vmem>>, %arg2: memref<216x128xbf16, #tpu.memory_space<vmem>>, %arg3: memref<1x16x128xf32, #tpu.memory_space<vmem>>, %arg4: memref<1x1x128xf32, #tpu.memory_space<vmem>>, %arg5: memref<1x1x128xf32, #tpu.memory_space<vmem>>) attributes {dimension_semantics = [#tpu.dimension_semantics<parallel>], iteration_bounds = array<i64: 2>, scalar_prefetch = 0 : i64, scratch_operands = 0 : i64, tpu.core_type = #tpu.core_type<tc>, window_params = [{transform_indices = @transform_0, window_bounds = array<i64: 1, 16, 64>}, {pipeline_mode = #tpu.pipeline_mode<synchronous>, transform_indices = @transform_1, window_bounds = array<i64: 216, 128>}, {transform_indices = @transform_2, window_bounds = array<i64: 1, 16, 128>}, {transform_indices = @transform_3, window_bounds = array<i64: 1, 1, 128>}, {transform_indices = @transform_4, window_bounds = array<i64: 1, 1, 128>}]} {
    %c0 = arith.constant 0 : index
    %c0_0 = arith.constant 0 : index
    %c0_1 = arith.constant 0 : index
    %0 = vector.load %arg1[%c0, %c0_0, %c0_1] : memref<1x16x64xf32, #tpu.memory_space<vmem>>, vector<1x16x64xf32>
    %1 = vector.shape_cast %0 : vector<1x16x64xf32> to vector<16x64xf32>
    %2 = arith.truncf %1 : vector<16x64xf32> to vector<16x64xbf16>
    %cst = arith.constant 0.000000e+00 : bf16
    %3 = vector.broadcast %cst : bf16 to vector<1x64xbf16>
    %cst_2 = arith.constant 0.000000e+00 : bf16
    %4 = vector.broadcast %cst_2 : bf16 to vector<18x4xbf16>
    %5 = tpu.concatenate %3, %2, %3 in 0 : vector<1x64xbf16>, vector<16x64xbf16>, vector<1x64xbf16> -> vector<18x64xbf16>
    %6 = tpu.concatenate %4, %5, %4 in 1 : vector<18x4xbf16>, vector<18x64xbf16>, vector<18x4xbf16> -> vector<18x72xbf16>
    %7 = vector.extract_strided_slice %6 {offsets = [0, 0], sizes = [16, 72], strides = [1, 1]} : vector<18x72xbf16> to vector<16x72xbf16>
    %8 = vector.extract_strided_slice %6 {offsets = [1, 0], sizes = [16, 72], strides = [1, 1]} : vector<18x72xbf16> to vector<16x72xbf16>
    %9 = vector.extract_strided_slice %6 {offsets = [2, 0], sizes = [16, 72], strides = [1, 1]} : vector<18x72xbf16> to vector<16x72xbf16>
    %10 = tpu.concatenate %7, %8, %9 in 1 : vector<16x72xbf16>, vector<16x72xbf16>, vector<16x72xbf16> -> vector<16x216xbf16>
    %c0_3 = arith.constant 0 : index
    %c0_4 = arith.constant 0 : index
    %11 = vector.load %arg2[%c0_3, %c0_4] : memref<216x128xbf16, #tpu.memory_space<vmem>>, vector<216x128xbf16>
    %cst_5 = arith.constant dense<0.000000e+00> : vector<16x128xf32>
    %12 = tpu.matmul %10, %11, %cst_5 {dimension_numbers = #tpu.dot_dimension_numbers<[1], [0], [0], [1], [0, 0, 1, 1], [], []>} : vector<16x216xbf16>, vector<216x128xbf16>, vector<16x128xf32> -> vector<16x128xf32>
    %c0_6 = arith.constant 0 : index
    %c0_7 = arith.constant 0 : index
    %c0_8 = arith.constant 0 : index
    %13 = vector.load %arg3[%c0_6, %c0_7, %c0_8] : memref<1x16x128xf32, #tpu.memory_space<vmem>>, vector<1x16x128xf32>
    %14 = vector.shape_cast %13 : vector<1x16x128xf32> to vector<16x128xf32>
    %15 = vector.shape_cast %12 : vector<16x128xf32> to vector<1x16x128xf32>
    tpu.vector_store %arg3[%c0_6, %c0_7, %c0_8], %15 {strides = array<i32>} : memref<1x16x128xf32, #tpu.memory_space<vmem>>, vector<1x16x128xf32>,
    %cst_9 = arith.constant dense<0.000000e+00> : vector<128xf32>
    %16 = vector.multi_reduction <add>, %12, %cst_9 [0] : vector<16x128xf32> to vector<128xf32>
    %17 = vector.shape_cast %16 : vector<128xf32> to vector<1x128xf32>
    %c0_10 = arith.constant 0 : index
    %c0_11 = arith.constant 0 : index
    %c0_12 = arith.constant 0 : index
    %18 = vector.load %arg4[%c0_10, %c0_11, %c0_12] : memref<1x1x128xf32, #tpu.memory_space<vmem>>, vector<1x1x128xf32>
    %19 = vector.shape_cast %18 : vector<1x1x128xf32> to vector<1x128xf32>
    %20 = vector.shape_cast %17 : vector<1x128xf32> to vector<1x1x128xf32>
    tpu.vector_store %arg4[%c0_10, %c0_11, %c0_12], %20 {strides = array<i32>} : memref<1x1x128xf32, #tpu.memory_space<vmem>>, vector<1x1x128xf32>,
    %21 = arith.mulf %12, %12 : vector<16x128xf32>
    %cst_13 = arith.constant dense<0.000000e+00> : vector<128xf32>
    %22 = vector.multi_reduction <add>, %21, %cst_13 [0] : vector<16x128xf32> to vector<128xf32>
    %23 = vector.shape_cast %22 : vector<128xf32> to vector<1x128xf32>
    %c0_14 = arith.constant 0 : index
    %c0_15 = arith.constant 0 : index
    %c0_16 = arith.constant 0 : index
    %24 = vector.load %arg5[%c0_14, %c0_15, %c0_16] : memref<1x1x128xf32, #tpu.memory_space<vmem>>, vector<1x1x128xf32>
    %25 = vector.shape_cast %24 : vector<1x1x128xf32> to vector<1x128xf32>
    %26 = vector.shape_cast %23 : vector<1x128xf32> to vector<1x1x128xf32>
    tpu.vector_store %arg5[%c0_14, %c0_15, %c0_16], %26 {strides = array<i32>} : memref<1x1x128xf32, #tpu.memory_space<vmem>>, vector<1x1x128xf32>,
    return
  }
  func.func @transform_0(%arg0: i32) -> (i32, i32, i32) {
    %c0_i32 = arith.constant 0 : i32
    %c0_i32_0 = arith.constant 0 : i32
    %c0_i32_1 = arith.constant 0 : i32
    return %arg0, %c0_i32, %c0_i32_0 : i32, i32, i32
  }
  func.func @transform_1(%arg0: i32) -> (i32, i32) {
    %c0_i32 = arith.constant 0 : i32
    %c0_i32_0 = arith.constant 0 : i32
    %c0_i32_1 = arith.constant 0 : i32
    return %c0_i32, %c0_i32_0 : i32, i32
  }
  func.func @transform_2(%arg0: i32) -> (i32, i32, i32) {
    %c0_i32 = arith.constant 0 : i32
    %c0_i32_0 = arith.constant 0 : i32
    %c0_i32_1 = arith.constant 0 : i32
    return %arg0, %c0_i32, %c0_i32_0 : i32, i32, i32
  }
  func.func @transform_3(%arg0: i32) -> (i32, i32, i32) {
    %c0_i32 = arith.constant 0 : i32
    %c0_i32_0 = arith.constant 0 : i32
    %c0_i32_1 = arith.constant 0 : i32
    return %arg0, %c0_i32, %c0_i32_0 : i32, i32, i32
  }
  func.func @transform_4(%arg0: i32) -> (i32, i32, i32) {
    %c0_i32 = arith.constant 0 : i32
    %c0_i32_0 = arith.constant 0 : i32
    %c0_i32_1 = arith.constant 0 : i32
    return %arg0, %c0_i32, %c0_i32_0 : i32, i32, i32
  }
}

module attributes {stable_mosaic.version = 11 : i64} {
  func.func @_conv3x3_kernel(%arg0: i32, %arg1: memref<1x16x128xf32, #tpu.memory_space<vmem>>, %arg2: memref<1x128xf32, #tpu.memory_space<vmem>>, %arg3: memref<1x128xf32, #tpu.memory_space<vmem>>, %arg4: memref<432x128xbf16, #tpu.memory_space<vmem>>, %arg5: memref<1x16x128xf32, #tpu.memory_space<vmem>>, %arg6: memref<1x1x128xf32, #tpu.memory_space<vmem>>, %arg7: memref<1x1x128xf32, #tpu.memory_space<vmem>>) attributes {dimension_semantics = [#tpu.dimension_semantics<parallel>], iteration_bounds = array<i64: 2>, scalar_prefetch = 0 : i64, scratch_operands = 0 : i64, tpu.core_type = #tpu.core_type<tc>, window_params = [{transform_indices = @transform_0, window_bounds = array<i64: 1, 16, 128>}, {pipeline_mode = #tpu.pipeline_mode<synchronous>, transform_indices = @transform_1, window_bounds = array<i64: 1, 128>}, {pipeline_mode = #tpu.pipeline_mode<synchronous>, transform_indices = @transform_2, window_bounds = array<i64: 1, 128>}, {pipeline_mode = #tpu.pipeline_mode<synchronous>, transform_indices = @transform_3, window_bounds = array<i64: 432, 128>}, {transform_indices = @transform_4, window_bounds = array<i64: 1, 16, 128>}, {transform_indices = @transform_5, window_bounds = array<i64: 1, 1, 128>}, {transform_indices = @transform_6, window_bounds = array<i64: 1, 1, 128>}]} {
    %c0 = arith.constant 0 : index
    %c0_0 = arith.constant 0 : index
    %c0_1 = arith.constant 0 : index
    %0 = vector.load %arg1[%c0, %c0_0, %c0_1] : memref<1x16x128xf32, #tpu.memory_space<vmem>>, vector<1x16x128xf32>
    %1 = vector.shape_cast %0 : vector<1x16x128xf32> to vector<16x128xf32>
    %c0_2 = arith.constant 0 : index
    %c0_3 = arith.constant 0 : index
    %2 = vector.load %arg2[%c0_2, %c0_3] : memref<1x128xf32, #tpu.memory_space<vmem>>, vector<1x128xf32>
    %3 = vector.broadcast %2 : vector<1x128xf32> to vector<16x128xf32>
    %4 = arith.mulf %1, %3 : vector<16x128xf32>
    %c0_4 = arith.constant 0 : index
    %c0_5 = arith.constant 0 : index
    %5 = vector.load %arg3[%c0_4, %c0_5] : memref<1x128xf32, #tpu.memory_space<vmem>>, vector<1x128xf32>
    %6 = vector.broadcast %5 : vector<1x128xf32> to vector<16x128xf32>
    %7 = arith.addf %4, %6 : vector<16x128xf32>
    %cst = arith.constant 0.000000e+00 : f32
    %8 = vector.broadcast %cst : f32 to vector<16x128xf32>
    %9 = arith.maximumf %7, %8 : vector<16x128xf32>
    %10 = arith.truncf %9 : vector<16x128xf32> to vector<16x128xbf16>
    %cst_6 = arith.constant 0.000000e+00 : bf16
    %11 = vector.broadcast %cst_6 : bf16 to vector<1x128xbf16>
    %cst_7 = arith.constant 0.000000e+00 : bf16
    %12 = vector.broadcast %cst_7 : bf16 to vector<18x8xbf16>
    %13 = tpu.concatenate %11, %10, %11 in 0 : vector<1x128xbf16>, vector<16x128xbf16>, vector<1x128xbf16> -> vector<18x128xbf16>
    %14 = tpu.concatenate %12, %13, %12 in 1 : vector<18x8xbf16>, vector<18x128xbf16>, vector<18x8xbf16> -> vector<18x144xbf16>
    %15 = vector.extract_strided_slice %14 {offsets = [0, 0], sizes = [16, 144], strides = [1, 1]} : vector<18x144xbf16> to vector<16x144xbf16>
    %16 = vector.extract_strided_slice %14 {offsets = [1, 0], sizes = [16, 144], strides = [1, 1]} : vector<18x144xbf16> to vector<16x144xbf16>
    %17 = vector.extract_strided_slice %14 {offsets = [2, 0], sizes = [16, 144], strides = [1, 1]} : vector<18x144xbf16> to vector<16x144xbf16>
    %18 = tpu.concatenate %15, %16, %17 in 1 : vector<16x144xbf16>, vector<16x144xbf16>, vector<16x144xbf16> -> vector<16x432xbf16>
    %c0_8 = arith.constant 0 : index
    %c0_9 = arith.constant 0 : index
    %19 = vector.load %arg4[%c0_8, %c0_9] : memref<432x128xbf16, #tpu.memory_space<vmem>>, vector<432x128xbf16>
    %cst_10 = arith.constant dense<0.000000e+00> : vector<16x128xf32>
    %20 = tpu.matmul %18, %19, %cst_10 {dimension_numbers = #tpu.dot_dimension_numbers<[1], [0], [0], [1], [0, 0, 1, 1], [], []>} : vector<16x432xbf16>, vector<432x128xbf16>, vector<16x128xf32> -> vector<16x128xf32>
    %c0_11 = arith.constant 0 : index
    %c0_12 = arith.constant 0 : index
    %c0_13 = arith.constant 0 : index
    %21 = vector.load %arg5[%c0_11, %c0_12, %c0_13] : memref<1x16x128xf32, #tpu.memory_space<vmem>>, vector<1x16x128xf32>
    %22 = vector.shape_cast %21 : vector<1x16x128xf32> to vector<16x128xf32>
    %23 = vector.shape_cast %20 : vector<16x128xf32> to vector<1x16x128xf32>
    tpu.vector_store %arg5[%c0_11, %c0_12, %c0_13], %23 {strides = array<i32>} : memref<1x16x128xf32, #tpu.memory_space<vmem>>, vector<1x16x128xf32>,
    %cst_14 = arith.constant dense<0.000000e+00> : vector<128xf32>
    %24 = vector.multi_reduction <add>, %20, %cst_14 [0] : vector<16x128xf32> to vector<128xf32>
    %25 = vector.shape_cast %24 : vector<128xf32> to vector<1x128xf32>
    %c0_15 = arith.constant 0 : index
    %c0_16 = arith.constant 0 : index
    %c0_17 = arith.constant 0 : index
    %26 = vector.load %arg6[%c0_15, %c0_16, %c0_17] : memref<1x1x128xf32, #tpu.memory_space<vmem>>, vector<1x1x128xf32>
    %27 = vector.shape_cast %26 : vector<1x1x128xf32> to vector<1x128xf32>
    %28 = vector.shape_cast %25 : vector<1x128xf32> to vector<1x1x128xf32>
    tpu.vector_store %arg6[%c0_15, %c0_16, %c0_17], %28 {strides = array<i32>} : memref<1x1x128xf32, #tpu.memory_space<vmem>>, vector<1x1x128xf32>,
    %29 = arith.mulf %20, %20 : vector<16x128xf32>
    %cst_18 = arith.constant dense<0.000000e+00> : vector<128xf32>
    %30 = vector.multi_reduction <add>, %29, %cst_18 [0] : vector<16x128xf32> to vector<128xf32>
    %31 = vector.shape_cast %30 : vector<128xf32> to vector<1x128xf32>
    %c0_19 = arith.constant 0 : index
    %c0_20 = arith.constant 0 : index
    %c0_21 = arith.constant 0 : index
    %32 = vector.load %arg7[%c0_19, %c0_20, %c0_21] : memref<1x1x128xf32, #tpu.memory_space<vmem>>, vector<1x1x128xf32>
    %33 = vector.shape_cast %32 : vector<1x1x128xf32> to vector<1x128xf32>
    %34 = vector.shape_cast %31 : vector<1x128xf32> to vector<1x1x128xf32>
    tpu.vector_store %arg7[%c0_19, %c0_20, %c0_21], %34 {strides = array<i32>} : memref<1x1x128xf32, #tpu.memory_space<vmem>>, vector<1x1x128xf32>,
    return
  }
  func.func @transform_0(%arg0: i32) -> (i32, i32, i32) {
    %c0_i32 = arith.constant 0 : i32
    %c0_i32_0 = arith.constant 0 : i32
    %c0_i32_1 = arith.constant 0 : i32
    return %arg0, %c0_i32, %c0_i32_0 : i32, i32, i32
  }
  func.func @transform_1(%arg0: i32) -> (i32, i32) {
    %c0_i32 = arith.constant 0 : i32
    %c0_i32_0 = arith.constant 0 : i32
    %c0_i32_1 = arith.constant 0 : i32
    return %c0_i32, %c0_i32_0 : i32, i32
  }
  func.func @transform_2(%arg0: i32) -> (i32, i32) {
    %c0_i32 = arith.constant 0 : i32
    %c0_i32_0 = arith.constant 0 : i32
    %c0_i32_1 = arith.constant 0 : i32
    return %c0_i32, %c0_i32_0 : i32, i32
  }
  func.func @transform_3(%arg0: i32) -> (i32, i32) {
    %c0_i32 = arith.constant 0 : i32
    %c0_i32_0 = arith.constant 0 : i32
    %c0_i32_1 = arith.constant 0 : i32
    return %c0_i32, %c0_i32_0 : i32, i32
  }
  func.func @transform_4(%arg0: i32) -> (i32, i32, i32) {
    %c0_i32 = arith.constant 0 : i32
    %c0_i32_0 = arith.constant 0 : i32
    %c0_i32_1 = arith.constant 0 : i32
    return %arg0, %c0_i32, %c0_i32_0 : i32, i32, i32
  }
  func.func @transform_5(%arg0: i32) -> (i32, i32, i32) {
    %c0_i32 = arith.constant 0 : i32
    %c0_i32_0 = arith.constant 0 : i32
    %c0_i32_1 = arith.constant 0 : i32
    return %arg0, %c0_i32, %c0_i32_0 : i32, i32, i32
  }
  func.func @transform_6(%arg0: i32) -> (i32, i32, i32) {
    %c0_i32 = arith.constant 0 : i32
    %c0_i32_0 = arith.constant 0 : i32
    %c0_i32_1 = arith.constant 0 : i32
    return %arg0, %c0_i32, %c0_i32_0 : i32, i32, i32
  }
}

module attributes {stable_mosaic.version = 11 : i64} {
  func.func @_bn_relu_kernel(%arg0: i32, %arg1: memref<1x16x128xf32, #tpu.memory_space<vmem>>, %arg2: memref<1x128xf32, #tpu.memory_space<vmem>>, %arg3: memref<1x128xf32, #tpu.memory_space<vmem>>, %arg4: memref<1x16x128xf32, #tpu.memory_space<vmem>>) attributes {dimension_semantics = [#tpu.dimension_semantics<parallel>], iteration_bounds = array<i64: 2>, scalar_prefetch = 0 : i64, scratch_operands = 0 : i64, tpu.core_type = #tpu.core_type<tc>, window_params = [{transform_indices = @transform_0, window_bounds = array<i64: 1, 16, 128>}, {pipeline_mode = #tpu.pipeline_mode<synchronous>, transform_indices = @transform_1, window_bounds = array<i64: 1, 128>}, {pipeline_mode = #tpu.pipeline_mode<synchronous>, transform_indices = @transform_2, window_bounds = array<i64: 1, 128>}, {transform_indices = @transform_3, window_bounds = array<i64: 1, 16, 128>}]} {
    %c0 = arith.constant 0 : index
    %c0_0 = arith.constant 0 : index
    %c0_1 = arith.constant 0 : index
    %0 = vector.load %arg1[%c0, %c0_0, %c0_1] : memref<1x16x128xf32, #tpu.memory_space<vmem>>, vector<1x16x128xf32>
    %1 = vector.shape_cast %0 : vector<1x16x128xf32> to vector<16x128xf32>
    %c0_2 = arith.constant 0 : index
    %c0_3 = arith.constant 0 : index
    %2 = vector.load %arg2[%c0_2, %c0_3] : memref<1x128xf32, #tpu.memory_space<vmem>>, vector<1x128xf32>
    %3 = vector.broadcast %2 : vector<1x128xf32> to vector<16x128xf32>
    %4 = arith.mulf %1, %3 : vector<16x128xf32>
    %c0_4 = arith.constant 0 : index
    %c0_5 = arith.constant 0 : index
    %5 = vector.load %arg3[%c0_4, %c0_5] : memref<1x128xf32, #tpu.memory_space<vmem>>, vector<1x128xf32>
    %6 = vector.broadcast %5 : vector<1x128xf32> to vector<16x128xf32>
    %7 = arith.addf %4, %6 : vector<16x128xf32>
    %cst = arith.constant 0.000000e+00 : f32
    %8 = vector.broadcast %cst : f32 to vector<16x128xf32>
    %9 = arith.maximumf %7, %8 : vector<16x128xf32>
    %c0_6 = arith.constant 0 : index
    %c0_7 = arith.constant 0 : index
    %c0_8 = arith.constant 0 : index
    %10 = vector.load %arg4[%c0_6, %c0_7, %c0_8] : memref<1x16x128xf32, #tpu.memory_space<vmem>>, vector<1x16x128xf32>
    %11 = vector.shape_cast %10 : vector<1x16x128xf32> to vector<16x128xf32>
    %12 = vector.shape_cast %9 : vector<16x128xf32> to vector<1x16x128xf32>
    tpu.vector_store %arg4[%c0_6, %c0_7, %c0_8], %12 {strides = array<i32>} : memref<1x16x128xf32, #tpu.memory_space<vmem>>, vector<1x16x128xf32>,
    return
  }
  func.func @transform_0(%arg0: i32) -> (i32, i32, i32) {
    %c0_i32 = arith.constant 0 : i32
    %c0_i32_0 = arith.constant 0 : i32
    %c0_i32_1 = arith.constant 0 : i32
    return %arg0, %c0_i32, %c0_i32_0 : i32, i32, i32
  }
  func.func @transform_1(%arg0: i32) -> (i32, i32) {
    %c0_i32 = arith.constant 0 : i32
    %c0_i32_0 = arith.constant 0 : i32
    %c0_i32_1 = arith.constant 0 : i32
    return %c0_i32, %c0_i32_0 : i32, i32
  }
  func.func @transform_2(%arg0: i32) -> (i32, i32) {
    %c0_i32 = arith.constant 0 : i32
    %c0_i32_0 = arith.constant 0 : i32
    %c0_i32_1 = arith.constant 0 : i32
    return %c0_i32, %c0_i32_0 : i32, i32
  }
  func.func @transform_3(%arg0: i32) -> (i32, i32, i32) {
    %c0_i32 = arith.constant 0 : i32
    %c0_i32_0 = arith.constant 0 : i32
    %c0_i32_1 = arith.constant 0 : i32
    return %arg0, %c0_i32, %c0_i32_0 : i32, i32, i32
  }
}

</mosaic_0001>

<bundles_post_ra>
// kernel: convolutional_block_forward.3
= control target key start
LH: loop header
LB: loop body
LE: loop exit
PB: predicated region body
PF: predicated region fallthrough
CT: control target
= control target key end

     0   :  { %s648_s15 = smov 0   ;;  %s722_s0 = inlined_call_operand.vmem [shape: f32[2,16,64], index: 0, kind: input, shape index: {}]   ;;  %s723_s1 = inlined_call_operand.vmem [shape: bf16[216,128], index: 1, kind: input, shape index: {}]   ;;  %s724_s2 = inlined_call_operand.vmem [shape: f32[2,16,128], index: 2, kind: output, shape index: {0}]   ;;  %s725_s3 = inlined_call_operand.vmem [shape: f32[2,1,128], index: 3, kind: output, shape index: {1}]   ;;  %s726_s4 = inlined_call_operand.vmem [shape: f32[2,1,128], index: 4, kind: output, shape index: {2}]  }
   0x1 LB: > { %s557_s16 = sadd.s32 4294967295, %s617_s15   ;;  %p561_p0 = scmp.ge.s32.totalorder %s617_s15, 1  ;;  %s617_s15 = sphi %s648_s15, %s15_s15  }
   0x2   : > { %p167_p1 = scmp.lt.s32.totalorder %s617_s15, 3 }
   0x4   : > { %p168_p2 = pnand %p561_p0, %p167_p1 }
   0x5   : > { %p199_p3 = scmp.lt.s32.totalorder (!%p168_p2), %s557_s16, 1  ;;  %s619_s21 = smov (!%p168_p2), 4  }
   0x6   : > { %171 = sbr.rel (%p168_p2) target bundleno = 485 (0x1e5), region = 28  ;;  %s621_s27 = smov (!%p168_p2), 72  }
   0x7   : > { %s622_s28 = smov (!%p168_p2), 16  }
   0xb   : > { %s728_s16 = smov (!%p199_p3, %s557_s16), 1  ;;  %vm228_vm0 = vcmask 1040384   ;;  %vm229_vm1 = vsmask.f32 256  ;;  %v597_v9 = vld [vmem:[%s723_s1 + $0x38] sm:$0xff]   ;;  %v620_v10 = vmov 0  }
   0xc   : > { %s583_s17 = sshll.u32 %s728_s16, 4  ;;  %vm230_vm2 = vmand %vm228_vm0, %vm229_vm1  ;;  %391 = vmatprep.subr.bf16.mxu0 %v620_v10  ;;  %v598_v11 = vld [vmem:[%s723_s1 + $0x30] sm:$0xff]   ;;  %v599_v12 = vld [vmem:[%s723_s1 + $0x28] sm:$0xff]   ;;  %vm387_vm3 = vcmask 1043456   ;;  %vm239_vm4 = vcmask 31744   ;;  %vm245_vm5 = vcmask 556032   ;;  %s211_s7 = scalar_lea.vmem %s725_s3, %s728_s16 }
   0xd   : > { %s203_s20 = scalar_lea.vmem %s722_s0, %s583_s17  ;;  %392 = vmatpush1.bf16.msra.mxu0 %v597_v9  ;;  %v600_v13 = vld [vmem:[%s723_s1 + $0x20] sm:$0xff]   ;;  %v601_v14 = vld [vmem:[%s723_s1 + $0x18] sm:$0xff]   ;;  %v602_v15 = vld [vmem:[%s723_s1 + $0x10] sm:$0xff]   ;;  %vm248_vm6 = vsmask.f32 7424  ;;  %vm263_vm7 = vcmask 1046528   ;;  %s208_s5 = scalar_lea.vmem %s724_s2, %s583_s17 }
   0xe   : > { %v216_v0 = vld [vmem:[%s203_s20] sm:$0xff]  ;;  %v217_v1 = vld [vmem:[%s203_s20 + $0x8] sm:$0xff]  ;;  %393 = vmatprep.subr.bf16.mxu0 %v620_v10  ;;  %v607_v21 = vld [vmem:[%s723_s1 + $0x58] sm:$0xff]   ;;  %vm273_vm8 = vcmask 130048   ;;  %vm384_vm9 = vcmask 719872   ;;  %vm269_vm10 = vcmask 588800   ;;  %s214_s10 = scalar_lea.vmem %s726_s4, %s728_s16 }
   0xf   : > { %v218_v2 = vpack.c.bf16 %v217_v1, %v216_v0  ;;  %v603_v16 = vld [vmem:[%s723_s1 + $0x8] sm:$0xff]   ;;  %v604_v17 = vld [vmem:[%s723_s1] sm:$0xff]   ;;  %v608_v22 = vld [vmem:[%s723_s1 + $0x50] sm:$0xff]  }
  0x10   : > { %v605_v18 = vld [vmem:[%s723_s1 + $0x68] ss:$0 sps:$4 sm:$0xff]   ;;  %v606_v20 = vld [vmem:[%s723_s1 + $0x60] sm:$0xff]  }
  0x11   : > { %v220_v3 = vshrl.u32 %v218_v2, 16  ;;  %v223_v4 = vshll.u32 %v218_v2, 16  ;;  %394 = vmatpush1.bf16.msra.mxu0 %v598_v11  ;;  %v389_v19 = vsel %vm387_vm3, %v605_v18, 0  ;;  %v609_v23 = vld [vmem:[%s723_s1 + $0x48] sm:$0xff]   ;;  %v610_v24 = vld [vmem:[%s723_s1 + $0x40] sm:$0xff]  }
  0x12   : > { %395 = vmatprep.subr.bf16.mxu0 %v620_v10 }
  0x13   : > { %v222_v5 = vrot.slane %v220_v3, 7 }
  0x15   : > { %v225_v6 = vor.u32 %v223_v4, %v222_v5  ;;  %v232_v8 = vsel %vm230_vm2, %v222_v5, 0  ;;  %396 = vmatpush1.bf16.msra.mxu0 %v599_v12 }
  0x16   : > { %397 = vmatprep.subr.bf16.mxu0 %v620_v10 }
  0x17   : > { %v231_v7 = vsel %vm230_vm2, 0, %v225_v6 }
  0x18   : > { %235 = vrot.lane.b32.xlu0 %v231_v7, %s619_s21 }
  0x19   : > { %398 = vmatpush1.bf16.msra.mxu0 %v600_v13 }
  0x1a   : > { %399 = vmatprep.subr.bf16.mxu0 %v620_v10 }
  0x1c   : > { %237 = vrot.lane.b32.xlu0 %v232_v8, %s619_s21 }
  0x1d   : > { %400 = vmatpush1.bf16.msra.mxu0 %v601_v14 }
  0x1e   : > { %401 = vmatprep.subr.bf16.mxu0 %v620_v10 }
  0x21   : > { %402 = vmatpush1.bf16.msra.mxu0 %v602_v15 }
  0x22   : > { %403 = vmatprep.subr.bf16.mxu0 %v620_v10 }
  0x25   : > { %404 = vmatpush1.bf16.msra.mxu0 %v603_v16 }
  0x26   : > { %405 = vmatprep.subr.bf16.mxu0 %v620_v10 }
  0x29   : > { %406 = vmatpush1.bf16.msra.mxu0 %v604_v17 }
  0x2a   : > { %411 = vmatprep.subr.bf16.mxu0 %v620_v10 }
  0x2d   : > { %412 = vmatpush2.bf16.msra.mxu0 %v389_v19 }
  0x2e   : > { %413 = vmatprep.subr.bf16.mxu0 %v620_v10 }
  0x31   : > { %414 = vmatpush2.bf16.msra.mxu0 %v606_v20 }
  0x32   : > { %415 = vmatprep.subr.bf16.mxu0 %v620_v10 }
  0x35   : > { %416 = vmatpush2.bf16.msra.mxu0 %v607_v21 }
  0x36   : > { %417 = vmatprep.subr.bf16.mxu0 %v620_v10 }
  0x39   : > { %418 = vmatpush2.bf16.msra.mxu0 %v608_v22 }
  0x3a   : > { %419 = vmatprep.subr.bf16.mxu0 %v620_v10 }
  0x3d   : > { %420 = vmatpush2.bf16.msra.mxu0 %v609_v23 }
  0x3e   : > { %421 = vmatprep.subr.bf16.mxu0 %v620_v10 }
  0x41   : > { %422 = vmatpush2.bf16.msra.mxu0 %v610_v24 }
  0x8a   : > { %v236_v25 = vpop.permute.xlu0 %235 }
  0x8b   : > { %v242_v26 = vsel %vm239_vm4, 0, %v236_v25 }
  0x8c   : > { %v246_v27 = vsel %vm245_vm5, %v242_v26, 0 }
  0x8d   : > { %v251_v28 = vshll.u32 %v246_v27, 16  ;;  %v249_v33 = vshrl.u32 %v246_v27, 16  ;;  %v264_v39 = vrot.slane %v246_v27, 1 }
  0x8e   : > { %v238_v29 = vpop.permute.xlu0 %237 }
  0x8f   : > { %v253_v30 = vrot.slane %v251_v28, 1  ;;  %v244_v31 = vsel %vm239_vm4, 0, %v238_v29 }
  0x90   : > { %v247_v32 = vsel %vm245_vm5, %v244_v31, 0 }
  0x91   : > { %v255_v34 = vshll.u32 %v247_v32, 16  ;;  %v254_v36 = vor.u32 %v253_v30, %v249_v33  ;;  %v265_v37 = vrot.slane %v247_v32, 1 }
  0x93   : > { %v257_v35 = vrot.slane %v255_v34, 1  ;;  %v266_v40 = vsel %vm263_vm7, %v264_v39, %v265_v37 }
  0x95   : > { %v258_v38 = vsel %vm248_vm6, %v254_v36, %v257_v35 }
  0x96   : > { %259 = vrot.lane.b32.xlu1 %v258_v38, %s621_s27 }
  0x9a   : > { %267 = vrot.lane.b32.xlu1 %v266_v40, %s622_s28 }
 0x108   : > { %v260_v41 = vpop.permute.xlu1 %259 }
 0x109   : > { %v271_v44 = vsel %vm269_vm10, %v246_v27, %v260_v41 }
 0x10c   : > { %v268_v42 = vpop.permute.xlu1 %267 }
 0x10d   : > { %v275_v43 = vsel %vm273_vm8, %v260_v41, %v268_v42 }
 0x10e   : > { %580 = vmatprep.mubr.msk.bf16.mxu0 %vm384_vm9, %v275_v43 }
 0x10f   : > { %424 = vmatmul.mubr.bf16.vlgmr.msra.gmra.mxu0 %v271_v44 }
 0x1cf   : > { %v425_v45 = vpop.f32.mrf.mxu0 }
 0x1d0   : > { %432 = vst [vmem:[%s208_s5] sm:$0xff] %v425_v45  ;;  %v442_v48 = vmul.f32 %v425_v45, %v425_v45 }
 0x1d1   : > { %v427_v46 = vpop.f32.mrf.mxu0 }
 0x1d3   : > { %v428_v47 = vpop.f32.mrf.mxu0 }
 0x1d4   : > { %433 = vst [vmem:[%s208_s5 + $0x8] sm:$0xff] %v428_v47  ;;  %v434_v49 = vadd.f32 %v428_v47, %v425_v45  ;;  %v443_v50 = vmul.f32 %v428_v47, %v428_v47 }
 0x1d5   : > { %v430_v51 = vpop.f32.mrf.mxu0 }
 0x1d6   : > { %v435_v52 = vrot.slane %v434_v49, 4  ;;  %v444_v53 = vadd.f32 %v443_v50, %v442_v48 }
 0x1d8   : > { %v436_v54 = vadd.f32 %v435_v52, %v434_v49  ;;  %v445_v55 = vrot.slane %v444_v53, 4 }
 0x1da   : > { %v437_v56 = vrot.slane %v436_v54, 2  ;;  %v446_v57 = vadd.f32 %v445_v55, %v444_v53 }
 0x1dc   : > { %v438_v58 = vadd.f32 %v437_v56, %v436_v54  ;;  %v447_v59 = vrot.slane %v446_v57, 2 }
 0x1de   : > { %v439_v60 = vrot.slane %v438_v58, 1  ;;  %v448_v61 = vadd.f32 %v447_v59, %v446_v57 }
 0x1e0   : > { %v440_v62 = vadd.f32 %v439_v60, %v438_v58  ;;  %v449_v63 = vrot.slane %v448_v61, 1 }
 0x1e2   : > { %441 = vst [vmem:[%s211_s7] sm:$0x1] %v440_v62  ;;  %v450_v0 = vadd.f32 %v449_v63, %v448_v61 }
 0x1e4   : > { %451 = vst [vmem:[%s214_s10] sm:$0x1] %v450_v0 }
 0x1e5 PF: > { %s15_s15 = sadd.s32 1, %s617_s15  }
 0x1e6   : > { %p12_p4 = scmp.ge.s32.totalorder %s15_s15, 4  }
 0x1e8   :  { %14 = sbr.rel (!%p12_p4) target bundleno = 1 (0x1), region = 82 }

// kernel: tile.23
= control target key start
LH: loop header
LB: loop body
LE: loop exit
PB: predicated region body
PF: predicated region fallthrough
CT: control target
= control target key end

     0   :  { %s28_s0 = inlined_call_operand.vmem [shape: f32[8], index: 0, kind: input, shape index: {}]   ;;  %s29_s1 = inlined_call_operand.vmem [shape: f32[16,8], index: 1, kind: output, shape index: {}]  }
   0x1   :  { %v4_v0 = vld [vmem:[%s28_s0] ss:$0 sm:$0xff] }
   0x2   :  { %5 = vst [vmem:[%s29_s1] sm:$0xff] %v4_v0  ;;  %8 = vst [vmem:[%s29_s1 + $0x8] sm:$0xff] %v4_v0 }

// kernel: tile.24
= control target key start
LH: loop header
LB: loop body
LE: loop exit
PB: predicated region body
PF: predicated region fallthrough
CT: control target
= control target key end

     0   :  { %s133_s10 = smov 120   ;;  %s134_s11 = smov 104   ;;  %vm3_vm0 = vcmask 64512   ;;  %vm9_vm1 = vcmask 1048512   ;;  %vm15_vm2 = vcmask 982912   ;;  %vm21_vm3 = vcmask 917312   ;;  %s209_s0 = inlined_call_operand.vmem [shape: f32[16,8], index: 0, kind: input, shape index: {}]   ;;  %s210_s1 = inlined_call_operand.vmem [shape: f32[1,128], index: 1, kind: output, shape index: {}]  }
   0x1   :  { %v103_v0 = vld [vmem:[%s209_s0 + $0xf] sm:$0x1]   ;;  %v105_v1 = vld [vmem:[%s209_s0 + $0xd] sm:$0x1]   ;;  %v104_v2 = vld [vmem:[%s209_s0 + $0xe] sm:$0x1]  }
   0x2   :  { %7 = vrot.lane.b32.xlu0 %v103_v0, %s133_s10  ;;  %19 = vrot.lane.b32.xlu1 %v105_v1, %s134_s11  ;;  %v106_v3 = vld [vmem:[%s209_s0 + $0xc] sm:$0x1]   ;;  %s135_s16 = smov 112   ;;  %s136_s17 = smov 96   ;;  %v107_v4 = vld [vmem:[%s209_s0 + $0xb] sm:$0x1]  }
   0x3   :  { %v108_v5 = vld [vmem:[%s209_s0 + $0xa] sm:$0x1]   ;;  %v2_v6 = vld [vmem:[%s209_s0] sm:$0x1]   ;;  %s137_s24 = smov 88   ;;  %s138_s25 = smov 80  }
   0x4   :  { %4 = vst.msk [vmem:[#allocation0] sm:$0x1] %vm3_vm0, %v2_v6   ;;  %v109_v7 = vld [vmem:[%s209_s0 + $0x9] sm:$0x1]   ;;  %v110_v8 = vld [vmem:[%s209_s0 + $0x8] sm:$0x1]  }
   0x5   :  { %s139_s30 = smov 72   ;;  %s140_s2 = smov 64   ;;  %v111_v9 = vld [vmem:[%s209_s0 + $0x7] sm:$0x1]   ;;  %v112_v10 = vld [vmem:[%s209_s0 + $0x6] sm:$0x1]  }
   0x6   :  { %13 = vrot.lane.b32.xlu0 %v104_v2, %s135_s16  ;;  %25 = vrot.lane.b32.xlu1 %v106_v3, %s136_s17  ;;  %s141_s7 = smov 56   ;;  %s142_s8 = smov 48   ;;  %v113_v11 = vld [vmem:[%s209_s0 + $0x5] sm:$0x1]   ;;  %v114_v12 = vld [vmem:[%s209_s0 + $0x4] sm:$0x1]  }
   0x7   :  { %s143_s13 = smov 40   ;;  %s144_s14 = smov 32   ;;  %v115_v13 = vld [vmem:[%s209_s0 + $0x3] sm:$0x1]   ;;  %v116_v14 = vld [vmem:[%s209_s0 + $0x2] sm:$0x1]  }
   0x8   :  { %s145_s19 = smov 24   ;;  %s146_s20 = smov 16   ;;  %v117_v15 = vld [vmem:[%s209_s0 + $0x1] sm:$0x1]   ;;  %vm27_vm4 = vcmask 851712   ;;  %vm33_vm5 = vcmask 786112  }
   0x9   :  { %s147_s0 = smov 8   ;;  %vm39_vm6 = vcmask 720512   ;;  %vm45_vm7 = vcmask 654912   ;;  %vm51_vm8 = vcmask 589312   ;;  %vm57_vm9 = vcmask 523712  }
   0xa   :  { %31 = vrot.lane.b32.xlu0 %v107_v4, %s137_s24  ;;  %37 = vrot.lane.b32.xlu1 %v108_v5, %s138_s25  ;;  %vm63_vm10 = vcmask 458112   ;;  %vm69_vm11 = vcmask 392512   ;;  %vm75_vm12 = vcmask 326912   ;;  %vm81_vm13 = vcmask 261312  }
   0xb   :  { %vm87_vm14 = vcmask 195712   ;;  %vm93_vm15 = vcmask 130112  }
   0xe   :  { %43 = vrot.lane.b32.xlu0 %v109_v7, %s139_s30  ;;  %49 = vrot.lane.b32.xlu1 %v110_v8, %s140_s2 }
  0x12   :  { %55 = vrot.lane.b32.xlu0 %v111_v9, %s141_s7  ;;  %61 = vrot.lane.b32.xlu1 %v112_v10, %s142_s8 }
  0x16   :  { %67 = vrot.lane.b32.xlu0 %v113_v11, %s143_s13  ;;  %73 = vrot.lane.b32.xlu1 %v114_v12, %s144_s14 }
  0x1a   :  { %79 = vrot.lane.b32.xlu0 %v115_v13, %s145_s19  ;;  %85 = vrot.lane.b32.xlu1 %v116_v14, %s146_s20 }
  0x1e   :  { %91 = vrot.lane.b32.xlu0 %v117_v15, %s147_s0 }
  0x74   :  { %v8_v16 = vpop.permute.xlu0 %7   ;;  %v20_v17 = vpop.permute.xlu1 %19  }
  0x75   :  { %10 = vst.msk [vmem:[#allocation0] sm:$0x1] %vm9_vm1, %v8_v16  }
  0x78   :  { %v14_v18 = vpop.permute.xlu0 %13   ;;  %v26_v19 = vpop.permute.xlu1 %25  }
  0x79   :  { %16 = vst.msk [vmem:[#allocation0] sm:$0x1] %vm15_vm2, %v14_v18  }
  0x7a   :  { %22 = vst.msk [vmem:[#allocation0] sm:$0x1] %vm21_vm3, %v20_v17  }
  0x7b   :  { %28 = vst.msk [vmem:[#allocation0] sm:$0x1] %vm27_vm4, %v26_v19  }
  0x7c   :  { %v32_v20 = vpop.permute.xlu0 %31   ;;  %v38_v21 = vpop.permute.xlu1 %37  }
  0x7d   :  { %34 = vst.msk [vmem:[#allocation0] sm:$0x1] %vm33_vm5, %v32_v20  }
  0x7e   :  { %40 = vst.msk [vmem:[#allocation0] sm:$0x1] %vm39_vm6, %v38_v21  }
  0x80   :  { %v44_v22 = vpop.permute.xlu0 %43   ;;  %v50_v23 = vpop.permute.xlu1 %49  }
  0x81   :  { %46 = vst.msk [vmem:[#allocation0] sm:$0x1] %vm45_vm7, %v44_v22  }
  0x82   :  { %52 = vst.msk [vmem:[#allocation0] sm:$0x1] %vm51_vm8, %v50_v23  }
  0x84   :  { %v56_v24 = vpop.permute.xlu0 %55   ;;  %v62_v25 = vpop.permute.xlu1 %61  }
  0x85   :  { %58 = vst.msk [vmem:[#allocation0] sm:$0x1] %vm57_vm9, %v56_v24  }
  0x86   :  { %64 = vst.msk [vmem:[#allocation0] sm:$0x1] %vm63_vm10, %v62_v25  }
  0x88   :  { %v68_v26 = vpop.permute.xlu0 %67   ;;  %v74_v27 = vpop.permute.xlu1 %73  }
  0x89   :  { %70 = vst.msk [vmem:[#allocation0] sm:$0x1] %vm69_vm11, %v68_v26  }
  0x8a   :  { %76 = vst.msk [vmem:[#allocation0] sm:$0x1] %vm75_vm12, %v74_v27  }
  0x8c   :  { %v80_v28 = vpop.permute.xlu0 %79   ;;  %v86_v29 = vpop.permute.xlu1 %85  }
  0x8d   :  { %82 = vst.msk [vmem:[#allocation0] sm:$0x1] %vm81_vm13, %v80_v28  }
  0x8e   :  { %88 = vst.msk [vmem:[#allocation0] sm:$0x1] %vm87_vm14, %v86_v29  }
  0x90   :  { %v92_v30 = vpop.permute.xlu0 %91  }
  0x91   :  { %94 = vst.msk [vmem:[#allocation0] sm:$0x1] %vm93_vm15, %v92_v30  }
  0x98   :  { %v99_v31 = vld [vmem:[#allocation0] sm:$0x1] }
  0x99   :  { %102 = vst [vmem:[%s210_s1] sm:$0x1] %v99_v31 }

// kernel: convolutional_block_forward.5
= control target key start
LH: loop header
LB: loop body
LE: loop exit
PB: predicated region body
PF: predicated region fallthrough
CT: control target
= control target key end

     0   :  { %s301_s12 = smov 0   ;;  %s318_s0 = inlined_call_operand.vmem [shape: f32[2,16,128], index: 0, kind: input, shape index: {}]   ;;  %s319_s1 = inlined_call_operand.vmem [shape: f32[1,128], index: 1, kind: input, shape index: {}]   ;;  %s320_s2 = inlined_call_operand.vmem [shape: f32[1,128], index: 2, kind: input, shape index: {}]   ;;  %s321_s3 = inlined_call_operand.vmem [shape: f32[2,16,128], index: 3, kind: output, shape index: {}]  }
   0x1 LB: > { %s250_s13 = sadd.s32 4294967295, %s279_s12   ;;  %p254_p0 = scmp.ge.s32.totalorder %s279_s12, 1  ;;  %s279_s12 = sphi %s301_s12, %s13_s12  }
   0x2   : > { %p137_p1 = scmp.lt.s32.totalorder %s279_s12, 3 }
   0x4   : > { %p138_p2 = pnand %p254_p0, %p137_p1 }
   0x5   : > { %p161_p3 = scmp.lt.s32.totalorder (!%p138_p2), %s250_s13, 1 }
   0x6   : > { %141 = sbr.rel (%p138_p2) target bundleno = 22 (0x16), region = 32 }
   0xb   : > { %s323_s13 = smov (!%p161_p3, %s250_s13), 1  ;;  %v259_v0 = vld [vmem:[%s319_s1] ss:$0 sm:$0xff] }
   0xc   : > { %s263_s14 = sshll.u32 %s323_s13, 4  ;;  %v260_v3 = vld [vmem:[%s320_s2] ss:$0 sm:$0xff] }
   0xd   : > { %s165_s19 = scalar_lea.vmem %s318_s0, %s263_s14  ;;  %s170_s24 = scalar_lea.vmem %s321_s3, %s263_s14 }
   0xe   : > { %v171_v1 = vld [vmem:[%s165_s19] sm:$0xff]  ;;  %v172_v2 = vld [vmem:[%s165_s19 + $0x8] sm:$0xff] }
   0xf   : > { %v180_v4 = vmul.f32 %v259_v0, %v171_v1  ;;  %v181_v5 = vmul.f32 %v259_v0, %v172_v2 }
  0x11   : > { %v189_v6 = vadd.f32 %v260_v3, %v180_v4  ;;  %v190_v7 = vadd.f32 %v260_v3, %v181_v5 }
  0x13   : > { %v191_v8 = vmax.f32 %v189_v6, 0.0  ;;  %v192_v9 = vmax.f32 %v190_v7, 0.0 }
  0x15   : > { %193 = vst [vmem:[%s170_s24] sm:$0xff] %v191_v8  ;;  %194 = vst [vmem:[%s170_s24 + $0x8] sm:$0xff] %v192_v9 }
  0x16 PF: > { %s13_s12 = sadd.s32 1, %s279_s12  }
  0x17   : > { %p10_p4 = scmp.ge.s32.totalorder %s13_s12, 4  }
  0x19   :  { %12 = sbr.rel (!%p10_p4) target bundleno = 1 (0x1), region = 62 }

// kernel: convolutional_block_forward.4
= control target key start
LH: loop header
LB: loop body
LE: loop exit
PB: predicated region body
PF: predicated region fallthrough
CT: control target
= control target key end

     0   :  { %s955_s21 = smov 0   ;;  %s1092_s0 = inlined_call_operand.vmem [shape: f32[2,16,128], index: 0, kind: input, shape index: {}]   ;;  %s1093_s1 = inlined_call_operand.vmem [shape: f32[1,128], index: 1, kind: input, shape index: {}]   ;;  %s1094_s2 = inlined_call_operand.vmem [shape: f32[1,128], index: 2, kind: input, shape index: {}]   ;;  %s1095_s3 = inlined_call_operand.vmem [shape: bf16[432,128], index: 3, kind: input, shape index: {}]   ;;  %s1096_s4 = inlined_call_operand.vmem [shape: f32[2,16,128], index: 4, kind: output, shape index: {0}]   ;;  %s1097_s5 = inlined_call_operand.vmem [shape: f32[2,1,128], index: 5, kind: output, shape index: {1}]   ;;  %s1098_s6 = inlined_call_operand.vmem [shape: f32[2,1,128], index: 6, kind: output, shape index: {2}]  }
   0x1 LB: > { %s802_s22 = sadd.s32 4294967295, %s914_s21   ;;  %p806_p0 = scmp.ge.s32.totalorder %s914_s21, 1  ;;  %s914_s21 = sphi %s955_s21, %s17_s21  }
   0x2   : > { %p217_p1 = scmp.lt.s32.totalorder %s914_s21, 3 }
   0x4   : > { %p218_p2 = pnand %p806_p0, %p217_p1 }
   0x5   : > { %p253_p3 = scmp.lt.s32.totalorder (!%p218_p2), %s802_s22, 1  ;;  %s916_s7 = smov (!%p218_p2), 8  }
   0x6   : > { %221 = sbr.rel (%p218_p2) target bundleno = 496 (0x1f0), region = 36  ;;  %s918_s20 = smov (!%p218_p2), 32  }
   0x7   : > { %s919_s23 = smov (!%p218_p2), 16  }
   0xb   : > { %s1100_s22 = smov (!%p253_p3, %s802_s22), 1  ;;  %v811_v0 = vld [vmem:[%s1093_s1] ss:$0 sm:$0xff]  ;;  %vm302_vm0 = vcmask 1040384   ;;  %vm303_vm1 = vsmask.f32 256 }
   0xc   : > { %s845_s25 = sshll.u32 %s1100_s22, 4  ;;  %v812_v1 = vld [vmem:[%s1094_s2] ss:$0 sm:$0xff]  ;;  %vm304_vm2 = vmand %vm302_vm0, %vm303_vm1  ;;  %v881_v17 = vld [vmem:[%s1095_s3 + $0xb8] sm:$0xff]   ;;  %v917_v20 = vmov 0   ;;  %vm313_vm3 = vcmask 64512   ;;  %s265_s29 = scalar_lea.vmem %s1097_s5, %s1100_s22 }
   0xd   : > { %s257_s30 = scalar_lea.vmem %s1092_s0, %s845_s25  ;;  %v882_v18 = vld [vmem:[%s1095_s3 + $0x78] sm:$0xff]   ;;  %636 = vmatprep.subr.bf16.mxu1 %v917_v20  ;;  %v885_v21 = vld [vmem:[%s1095_s3 + $0x70] sm:$0xff]   ;;  %v888_v24 = vld [vmem:[%s1095_s3 + $0x68] sm:$0xff]   ;;  %vm353_vm4 = vcmask 1046528   ;;  %vm322_vm5 = vsmask.f32 7424  ;;  %s262_s27 = scalar_lea.vmem %s1096_s4, %s845_s25 }
   0xe   : > { %v270_v2 = vld [vmem:[%s257_s30] sm:$0xff]  ;;  %v271_v3 = vld [vmem:[%s257_s30 + $0x8] sm:$0xff]  ;;  %v883_v19 = vld [vmem:[%s1095_s3 + $0x38] sm:$0xff]   ;;  %637 = vmatpush1.bf16.msra.mxu1 %v881_v17  ;;  %847 = vmatprep.subr.bf16.mxu0 %v882_v18  ;;  %vm347_vm6 = vcmask 130048   ;;  %vm364_vm8 = vcmask 261120   ;;  %vm591_vm9 = vcmask 392192   ;;  %s268_s8 = scalar_lea.vmem %s1098_s6, %s1100_s22 }
   0xf   : > { %v279_v4 = vmul.f32 %v811_v0, %v270_v2  ;;  %v280_v5 = vmul.f32 %v811_v0, %v271_v3  ;;  %v884_v22 = vld [vmem:[%s1095_s3 + $0xb0] sm:$0xff]   ;;  %638 = vmatprep.subr.bf16.mxu1 %v917_v20  ;;  %848 = vmatpush3.bf16.msra.mxu0 %v883_v19  ;;  %v887_v25 = vld [vmem:[%s1095_s3 + $0xa8] sm:$0xff]   ;;  %v891_v27 = vld [vmem:[%s1095_s3 + $0x60] sm:$0xff]  }
  0x10   : > { %v886_v23 = vld [vmem:[%s1095_s3 + $0x30] sm:$0xff]   ;;  %849 = vmatprep.subr.bf16.mxu0 %v885_v21  ;;  %v889_v26 = vld [vmem:[%s1095_s3 + $0x28] sm:$0xff]   ;;  %v890_v28 = vld [vmem:[%s1095_s3 + $0xa0] sm:$0xff]  }
  0x11   : > { %v288_v6 = vadd.f32 %v812_v1, %v279_v4  ;;  %v289_v7 = vadd.f32 %v812_v1, %v280_v5  ;;  %v892_v29 = vld [vmem:[%s1095_s3 + $0x20] sm:$0xff]   ;;  %v894_v30 = vld [vmem:[%s1095_s3 + $0x58] sm:$0xff]   ;;  %v897_v33 = vld [vmem:[%s1095_s3 + $0x50] sm:$0xff]  }
  0x12   : > { %639 = vmatpush1.bf16.msra.mxu1 %v884_v22  ;;  %v893_v31 = vld [vmem:[%s1095_s3 + $0x98] sm:$0xff]   ;;  %v896_v34 = vld [vmem:[%s1095_s3 + $0x90] sm:$0xff]   ;;  %v900_v36 = vld [vmem:[%s1095_s3 + $0x48] sm:$0xff]  }
  0x13   : > { %v290_v8 = vmax.f32 %v288_v6, 0.0  ;;  %v291_v9 = vmax.f32 %v289_v7, 0.0  ;;  %640 = vmatprep.subr.bf16.mxu1 %v917_v20  ;;  %850 = vmatpush3.bf16.msra.mxu0 %v886_v23  ;;  %v895_v32 = vld [vmem:[%s1095_s3 + $0x18] sm:$0xff]   ;;  %v898_v35 = vld [vmem:[%s1095_s3 + $0x10] sm:$0xff]   ;;  %v899_v37 = vld [vmem:[%s1095_s3 + $0x88] sm:$0xff]  }
  0x14   : > { %851 = vmatprep.subr.bf16.mxu0 %v888_v24  ;;  %v901_v38 = vld [vmem:[%s1095_s3 + $0x8] sm:$0xff]   ;;  %v902_v39 = vld [vmem:[%s1095_s3 + $0x80] sm:$0xff]   ;;  %v905_v42 = vld [vmem:[%s1095_s3 + $0xd0] sm:$0xff]  }
  0x15   : > { %v292_v10 = vpack.c.bf16 %v291_v9, %v290_v8  ;;  %v903_v40 = vld [vmem:[%s1095_s3 + $0x40] sm:$0xff]   ;;  %v906_v44 = vld [vmem:[%s1095_s3 + $0xc8] sm:$0xff]   ;;  %vm840_vm7 = vmneg %vm313_vm3 }
  0x16   : > { %641 = vmatpush1.bf16.msra.mxu1 %v887_v25  ;;  %v904_v41 = vld [vmem:[%s1095_s3] sm:$0xff]  }
  0x17   : > { %v294_v11 = vshrl.u32 %v292_v10, 16  ;;  %v297_v12 = vshll.u32 %v292_v10, 16  ;;  %642 = vmatprep.subr.bf16.mxu1 %v917_v20  ;;  %852 = vmatpush3.bf16.msra.mxu0 %v889_v26  ;;  %v907_v48 = vld [vmem:[%s1095_s3 + $0xc0] sm:$0xff]  }
  0x18   : > { %853 = vmatprep.subr.bf16.mxu0 %v891_v27 }
  0x19   : > { %v296_v13 = vrot.slane %v294_v11, 7 }
  0x1a   : > { %643 = vmatpush1.bf16.msra.mxu1 %v890_v28 }
  0x1b   : > { %v299_v14 = vor.u32 %v297_v12, %v296_v13  ;;  %v306_v16 = vsel %vm304_vm2, %v296_v13, 0  ;;  %644 = vmatprep.subr.bf16.mxu1 %v917_v20  ;;  %854 = vmatpush3.bf16.msra.mxu0 %v892_v29 }
  0x1c   : > { %855 = vmatprep.subr.bf16.mxu0 %v894_v30 }
  0x1d   : > { %v305_v15 = vsel %vm304_vm2, 0, %v299_v14 }
  0x1e   : > { %309 = vrot.lane.b32.xlu0 %v305_v15, %s916_s7  ;;  %645 = vmatpush1.bf16.msra.mxu1 %v893_v31 }
  0x1f   : > { %646 = vmatprep.subr.bf16.mxu1 %v917_v20  ;;  %856 = vmatpush3.bf16.msra.mxu0 %v895_v32 }
  0x20   : > { %857 = vmatprep.subr.bf16.mxu0 %v897_v33 }
  0x22   : > { %311 = vrot.lane.b32.xlu0 %v306_v16, %s916_s7  ;;  %647 = vmatpush1.bf16.msra.mxu1 %v896_v34 }
  0x23   : > { %648 = vmatprep.subr.bf16.mxu1 %v917_v20  ;;  %858 = vmatpush3.bf16.msra.mxu0 %v898_v35 }
  0x24   : > { %859 = vmatprep.subr.bf16.mxu0 %v900_v36 }
  0x26   : > { %649 = vmatpush1.bf16.msra.mxu1 %v899_v37 }
  0x27   : > { %650 = vmatprep.subr.bf16.mxu1 %v917_v20  ;;  %860 = vmatpush3.bf16.msra.mxu0 %v901_v38 }
  0x28   : > { %861 = vmatprep.subr.bf16.mxu0 %v903_v40 }
  0x2a   : > { %651 = vmatpush1.bf16.msra.mxu1 %v902_v39 }
  0x2b   : > { %662 = vmatprep.subr.bf16.mxu1 %v917_v20  ;;  %862 = vmatpush3.bf16.msra.mxu0 %v904_v41 }
  0x2e   : > { %663 = vmatpush2.bf16.msra.mxu1 %v905_v42 }
  0x2f   : > { %664 = vmatprep.subr.bf16.mxu1 %v917_v20 }
  0x32   : > { %665 = vmatpush2.bf16.msra.mxu1 %v906_v44 }
  0x33   : > { %666 = vmatprep.subr.bf16.mxu1 %v917_v20 }
  0x36   : > { %667 = vmatpush2.bf16.msra.mxu1 %v907_v48 }
  0x90   : > { %v310_v43 = vpop.permute.xlu0 %309 }
  0x91   : > { %v316_v45 = vsel %vm313_vm3, 0, %v310_v43  ;;  %v320_v46 = vsel %vm313_vm3, %v310_v43, 0 }
  0x92   : > { %v325_v47 = vshll.u32 %v316_v45, 16  ;;  %v335_v50 = vshll.u32 %v320_v46, 16  ;;  %v323_v52 = vshrl.u32 %v316_v45, 16  ;;  %v354_v55 = vrot.slane %v316_v45, 1 }
  0x93   : > { %v333_v63 = vshrl.u32 %v320_v46, 16  ;;  %v357_v5 = vrot.slane %v320_v46, 1 }
  0x94   : > { %v327_v49 = vrot.slane %v325_v47, 1  ;;  %v312_v51 = vpop.permute.xlu0 %311  ;;  %v337_v59 = vrot.slane %v335_v50, 1 }
  0x95   : > { %v319_v53 = vsel %vm313_vm3, 0, %v312_v51  ;;  %v321_v54 = vsel %vm313_vm3, %v312_v51, 0 }
  0x96   : > { %v329_v56 = vshll.u32 %v319_v53, 16  ;;  %v339_v57 = vshll.u32 %v321_v54, 16  ;;  %v355_v58 = vrot.slane %v319_v53, 1  ;;  %v328_v62 = vor.u32 %v327_v49, %v323_v52 }
  0x97   : > { %v338_v2 = vor.u32 %v337_v59, %v333_v63  ;;  %v358_v3 = vrot.slane %v321_v54, 1 }
  0x98   : > { %v331_v60 = vrot.slane %v329_v56, 1  ;;  %v356_v61 = vsel %vm353_vm4, %v354_v55, %v355_v58  ;;  %v341_v0 = vrot.slane %v339_v57, 1 }
  0x99   : > { %360 = vrot.lane.b32.xlu0 %v356_v61, %s918_s20  ;;  %v359_v6 = vsel %vm353_vm4, %v357_v5, %v358_v3 }
  0x9a   : > { %v332_v1 = vsel %vm322_vm5, %v328_v62, %v331_v60  ;;  %v342_v4 = vsel %vm322_vm5, %v338_v2, %v341_v0 }
  0x9b   : > { %343 = vrot.lane.b32.xlu1 %v332_v1, %s919_s23 }
  0x9f   : > { %345 = vrot.lane.b32.xlu1 %v342_v4, %s919_s23 }
  0xa3   : > { %362 = vrot.lane.b32.xlu1 %v359_v6, %s918_s20 }
 0x10b   : > { %v361_v11 = vpop.permute.xlu0 %360 }
 0x10d   : > { %v344_v7 = vpop.permute.xlu1 %343 }
 0x10e   : > { %v368_v8 = vsel %vm347_vm6, %v320_v46, %v344_v7 }
 0x10f   : > { %627 = vmatprep.mubr.bf16.mxu0 %v368_v8 }
 0x110   : > { %841 = vmatmul.mubr.msk.bf16.vlgmr.msra.gmra.mxu0 %vm840_vm7, %v310_v43 }
 0x111   : > { %v346_v9 = vpop.permute.xlu1 %345 }
 0x112   : > { %v348_v10 = vsel %vm347_vm6, %v344_v7, %v346_v9 }
 0x113   : > { %v373_v14 = vsel %vm364_vm8, %v348_v10, %v361_v11 }
 0x115   : > { %v363_v12 = vpop.permute.xlu1 %362 }
 0x116   : > { %v365_v13 = vsel %vm364_vm8, %v361_v11, %v363_v12 }
 0x117   : > { %842 = vmatprep.mubr.msk.bf16.mxu1 %vm591_vm9, %v365_v13 }
 0x118   : > { %669 = vmatmul.mubr.bf16.vlgmr.msra.gmra.mxu1 %v373_v14 }
 0x1d0   : > { %v863_v15 = vpop.f32.mrf.mxu0 }
 0x1d2   : > { %v864_v16 = vpop.f32.mrf.mxu0 }
 0x1d3   : > { %v865_v18 = vadd.f32 %v864_v16, %v863_v15 }
 0x1d4   : > { %v866_v17 = vpop.f32.mrf.mxu0 }
 0x1d6   : > { %v867_v19 = vpop.f32.mrf.mxu0 }
 0x1d7   : > { %v868_v23 = vadd.f32 %v867_v19, %v866_v17 }
 0x1d8   : > { %v670_v20 = vpop.f32.mrf.mxu1 }
 0x1d9   : > { %v671_v21 = vadd.f32 %v865_v18, %v670_v20 }
 0x1da   : > { %v672_v22 = vpop.f32.mrf.mxu1 }
 0x1db   : > { %677 = vst [vmem:[%s262_s27] sm:$0xff] %v671_v21  ;;  %v687_v27 = vmul.f32 %v671_v21, %v671_v21 }
 0x1dc   : > { %v673_v24 = vpop.f32.mrf.mxu1 }
 0x1dd   : > { %v674_v25 = vadd.f32 %v868_v23, %v673_v24 }
 0x1de   : > { %v675_v26 = vpop.f32.mrf.mxu1 }
 0x1df   : > { %678 = vst [vmem:[%s262_s27 + $0x8] sm:$0xff] %v674_v25  ;;  %v679_v28 = vadd.f32 %v674_v25, %v671_v21  ;;  %v688_v29 = vmul.f32 %v674_v25, %v674_v25 }
 0x1e1   : > { %v680_v30 = vrot.slane %v679_v28, 4  ;;  %v689_v31 = vadd.f32 %v688_v29, %v687_v27 }
 0x1e3   : > { %v681_v32 = vadd.f32 %v680_v30, %v679_v28  ;;  %v690_v33 = vrot.slane %v689_v31, 4 }
 0x1e5   : > { %v682_v34 = vrot.slane %v681_v32, 2  ;;  %v691_v35 = vadd.f32 %v690_v33, %v689_v31 }
 0x1e7   : > { %v683_v36 = vadd.f32 %v682_v34, %v681_v32  ;;  %v692_v37 = vrot.slane %v691_v35, 2 }
 0x1e9   : > { %v684_v38 = vrot.slane %v683_v36, 1  ;;  %v693_v39 = vadd.f32 %v692_v37, %v691_v35 }
 0x1eb   : > { %v685_v40 = vadd.f32 %v684_v38, %v683_v36  ;;  %v694_v41 = vrot.slane %v693_v39, 1 }
 0x1ed   : > { %686 = vst [vmem:[%s265_s29] sm:$0x1] %v685_v40  ;;  %v695_v42 = vadd.f32 %v694_v41, %v693_v39 }
 0x1ef   : > { %696 = vst [vmem:[%s268_s8] sm:$0x1] %v695_v42 }
 0x1f0 PF: > { %s17_s21 = sadd.s32 1, %s914_s21  }
 0x1f1   : > { %p14_p4 = scmp.ge.s32.totalorder %s17_s21, 4  }
 0x1f3   :  { %16 = sbr.rel (!%p14_p4) target bundleno = 1 (0x1), region = 90 }

</bundles_post_ra>
